<compile_context>
chip_gen: v6e
topology: v6e:2x2x1
jax: 0.10.0
libtpu: 0.0.40
codegen_flags: <defaults>
</compile_context>

<pallas_src>
import numpy as np
import jax
import jax.numpy as jnp
from jax.experimental import pallas as pl
from jax.experimental.pallas import tpu as pltpu


def _ldam_kernel(x_ref, tgt_ref, mask_ref, m_ref, out_ref, num_acc, cnt_acc):
    i = pl.program_id(0)

    @pl.when(i == 0)
    def _():
        num_acc[...] = jnp.zeros_like(num_acc)
        cnt_acc[...] = jnp.zeros_like(cnt_acc)

    x = x_ref[...].astype(jnp.float32)          # [TN, C]  (cast in-kernel)
    tgt = tgt_ref[...]                          # [TN, 1]  int32
    msk = mask_ref[...].astype(jnp.float32)     # [TN, 1]  0/1
    m = m_ref[...].astype(jnp.float32)          # [1, C]

    tn, c = x.shape
    col = jax.lax.broadcasted_iota(jnp.int32, (tn, c), 1)
    eq = col == tgt                             # [TN, C] boolean one-hot of target

    # batch_m = m_list[target]  (gather via masked lane reduction)
    batch_m = jnp.sum(jnp.where(eq, m, 0.0), axis=-1, keepdims=True)       # [TN, 1]
    # target logit of the margin-adjusted logits: x[target] - batch_m
    tgt_logit = jnp.sum(jnp.where(eq, x, 0.0), axis=-1, keepdims=True) - batch_m

    # output = where(index, x - batch_m, x); per-sample CE = logsumexp(out) - out[target]
    out = jnp.where(eq, x - batch_m, x)                                    # [TN, C]
    row_max = jnp.max(out, axis=-1, keepdims=True)
    lse = jnp.log(jnp.sum(jnp.exp(out - row_max), axis=-1, keepdims=True)) + row_max
    per_sample = lse - tgt_logit                                           # [TN, 1]

    # accumulate masked numerator and mask count across batch tiles
    num_acc[...] += jnp.sum(per_sample * msk, axis=0, keepdims=True)
    cnt_acc[...] += jnp.sum(msk, axis=0, keepdims=True)

    @pl.when(i == pl.num_programs(0) - 1)
    def _():
        # NOTE: an all-false mask yields inf/nan (division by zero), matching
        # the PyTorch module's behavior.
        out_ref[...] = num_acc[...] / cnt_acc[...]


def _round_up(a, b):
    return ((a + b - 1) // b) * b


def ldam_loss_with_mask(x, target, mask, m_list, *, tile_n=512):
    """x: [N, C] float (any float dtype), target: [N] int, mask: [N] bool, m_list: [C] float."""
    n, c = x.shape

    # batch tile: multiple of 8 sublanes, capped by (padded) N
    tn = max(8, min(_round_up(tile_n, 8), _round_up(n, 8)))
    n_pad = _round_up(n, tn)
    pad = n_pad - n
    if pad:
        x = jnp.pad(x, ((0, pad), (0, 0)))      # padded rows: zeros
        target = jnp.pad(target, (0, pad))      # padded targets -> class 0 (safe)
        mask = jnp.pad(mask, (0, pad))          # padded rows -> mask 0

    tgt2d = target.reshape(n_pad, 1).astype(jnp.int32)
    mask2d = mask.reshape(n_pad, 1).astype(jnp.float32)
    m2d = m_list.reshape(1, c).astype(jnp.float32)

    grid = (n_pad // tn,)
    out = pl.pallas_call(
        _ldam_kernel,
        out_shape=jax.ShapeDtypeStruct((1, 1), jnp.float32),
        grid=grid,
        in_specs=[
            pl.BlockSpec((tn, c), lambda i: (i, 0)),   # x: streamed batch tiles (native dtype)
            pl.BlockSpec((tn, 1), lambda i: (i, 0)),   # target
            pl.BlockSpec((tn, 1), lambda i: (i, 0)),   # mask
            pl.BlockSpec((1, c), lambda i: (0, 0)),    # m_list: resident across the grid
        ],
        out_specs=pl.BlockSpec((1, 1), lambda i: (0, 0)),
        scratch_shapes=[
            pltpu.VMEM((1, 1), jnp.float32),           # masked-CE numerator
            pltpu.VMEM((1, 1), jnp.float32),           # mask count
        ],
        compiler_params=pltpu.CompilerParams(
            dimension_semantics=("arbitrary",),        # accumulator carried across tiles
        ),
    )(x, tgt2d, mask2d, m2d)
    return out[0, 0]


def make_m_list(cls_num_list, max_m=2.4):
    m = 1.0 / np.sqrt(np.sqrt(np.asarray(cls_num_list, dtype=np.float64)))
    m = m * (max_m / np.max(m))
    return jnp.asarray(m, dtype=jnp.float32)


def _reference(x, target, mask, m_list):
    # pure-JAX reference for sanity checking
    xf = x.astype(jnp.float32)
    onehot = jax.nn.one_hot(target, x.shape[1], dtype=jnp.float32)
    batch_m = m_list[target][:, None]
    out = jnp.where(onehot.astype(bool), xf - batch_m, xf)
    logp = jax.nn.log_softmax(out, axis=-1)
    per = -jnp.take_along_axis(logp, target[:, None], axis=1)[:, 0]
    mf = mask.astype(jnp.float32)
    return jnp.sum(per * mf) / jnp.sum(mf)


if __name__ == "__main__":
    # TODO(synk): per-class `weight` path (weight is not None) not implemented;
    # the module's default (weight=None) is what this kernel reproduces.
    key = jax.random.PRNGKey(0)
    N, C = 10, 16  # N deliberately not a multiple of the tile -> exercises the padded tail

    cls_num_list = [100, 80, 60, 50, 40, 30, 25, 20, 15, 12, 10, 8, 6, 5, 4, 2]
    m_list = make_m_list(cls_num_list, max_m=2.4)

    kx, kt, km = jax.random.split(key, 3)
    x = jax.random.normal(kx, (N, C), dtype=jnp.float32)
    target = jax.random.randint(kt, (N,), 0, C, dtype=jnp.int32)
    mask = jax.random.bernoulli(km, 0.75, (N,))
    # guarantee at least one masked element so w > 0
    mask = mask.at[0].set(True)

    # tile_n=8 -> multi-step grid even at this toy size (init / accumulate /
    # finalize branches and the padded tail all get exercised).
    loss = ldam_loss_with_mask(x, target, mask, m_list, tile_n=8)
    jax.block_until_ready(loss)

    ref = _reference(x, target, mask, m_list)
    assert jnp.allclose(loss, ref, rtol=1e-5, atol=1e-5), (loss, ref)
    print("KERNEL_OK")
</pallas_src>

<mosaic_0001>
module attributes {stable_mosaic.version = 11 : i64} {
  func.func @_ldam_kernel(%arg0: i32, %arg1: memref<8x16xf32, #tpu.memory_space<vmem>>, %arg2: memref<8x1xi32, #tpu.memory_space<vmem>>, %arg3: memref<8x1xf32, #tpu.memory_space<vmem>>, %arg4: memref<1x16xf32, #tpu.memory_space<vmem>>, %arg5: memref<1x1xf32, #tpu.memory_space<vmem>>, %arg6: memref<1x1xf32, #tpu.memory_space<vmem>>, %arg7: memref<1x1xf32, #tpu.memory_space<vmem>>) attributes {dimension_semantics = [#tpu.dimension_semantics<arbitrary>], iteration_bounds = array<i64: 2>, scalar_prefetch = 0 : i64, scratch_operands = 2 : i64, tpu.core_type = #tpu.core_type<tc>, window_params = [{transform_indices = @transform_0, window_bounds = array<i64: 8, 16>}, {transform_indices = @transform_1, window_bounds = array<i64: 8, 1>}, {transform_indices = @transform_2, window_bounds = array<i64: 8, 1>}, {pipeline_mode = #tpu.pipeline_mode<synchronous>, transform_indices = @transform_3, window_bounds = array<i64: 1, 16>}, {pipeline_mode = #tpu.pipeline_mode<synchronous>, transform_indices = @transform_4, window_bounds = array<i64: 1, 1>}]} {
    %c0_i32 = arith.constant 0 : i32
    %0 = arith.cmpi eq, %arg0, %c0_i32 : i32
    %1 = arith.extui %0 : i1 to i32
    %c0_i32_0 = arith.constant 0 : i32
    %2 = arith.cmpi ne, %1, %c0_i32_0 : i32
    scf.if %2 {
      %cst_24 = arith.constant 0.000000e+00 : f32
      %48 = vector.broadcast %cst_24 : f32 to vector<1x1xf32>
      %c0_25 = arith.constant 0 : index
      %c0_26 = arith.constant 0 : index
      %49 = vector.load %arg6[%c0_25, %c0_26] : memref<1x1xf32, #tpu.memory_space<vmem>>, vector<1x1xf32>
      tpu.vector_store %arg6[%c0_25, %c0_26], %48 {strides = array<i32>} : memref<1x1xf32, #tpu.memory_space<vmem>>, vector<1x1xf32>,
      %cst_27 = arith.constant 0.000000e+00 : f32
      %50 = vector.broadcast %cst_27 : f32 to vector<1x1xf32>
      %c0_28 = arith.constant 0 : index
      %c0_29 = arith.constant 0 : index
      %51 = vector.load %arg7[%c0_28, %c0_29] : memref<1x1xf32, #tpu.memory_space<vmem>>, vector<1x1xf32>
      tpu.vector_store %arg7[%c0_28, %c0_29], %50 {strides = array<i32>} : memref<1x1xf32, #tpu.memory_space<vmem>>, vector<1x1xf32>,
    } else {
    }
    %c0 = arith.constant 0 : index
    %c0_1 = arith.constant 0 : index
    %3 = vector.load %arg1[%c0, %c0_1] : memref<8x16xf32, #tpu.memory_space<vmem>>, vector<8x16xf32>
    %c0_2 = arith.constant 0 : index
    %c0_3 = arith.constant 0 : index
    %4 = vector.load %arg2[%c0_2, %c0_3] : memref<8x1xi32, #tpu.memory_space<vmem>>, vector<8x1xi32>
    %c0_4 = arith.constant 0 : index
    %c0_5 = arith.constant 0 : index
    %5 = vector.load %arg3[%c0_4, %c0_5] : memref<8x1xf32, #tpu.memory_space<vmem>>, vector<8x1xf32>
    %c0_6 = arith.constant 0 : index
    %c0_7 = arith.constant 0 : index
    %6 = vector.load %arg4[%c0_6, %c0_7] : memref<1x16xf32, #tpu.memory_space<vmem>>, vector<1x16xf32>
    %7 = tpu.iota {dimensions = array<i32: 1>} : vector<8x16xi32>
    %8 = vector.broadcast %4 : vector<8x1xi32> to vector<8x16xi32>
    %9 = arith.cmpi eq, %7, %8 : vector<8x16xi32>
    %cst = arith.constant 0.000000e+00 : f32
    %10 = vector.shape_cast %6 : vector<1x16xf32> to vector<1x16xf32>
    %11 = vector.broadcast %10 : vector<1x16xf32> to vector<8x16xf32>
    %12 = vector.broadcast %cst : f32 to vector<8x16xf32>
    %13 = arith.select %9, %11, %12 : vector<8x16xi1>, vector<8x16xf32>
    %cst_8 = arith.constant dense<0.000000e+00> : vector<8xf32>
    %14 = vector.multi_reduction <add>, %13, %cst_8 [1] : vector<8x16xf32> to vector<8xf32>
    %15 = vector.shape_cast %14 : vector<8xf32> to vector<8x1xf32>
    %cst_9 = arith.constant 0.000000e+00 : f32
    %16 = vector.broadcast %cst_9 : f32 to vector<8x16xf32>
    %17 = arith.select %9, %3, %16 : vector<8x16xi1>, vector<8x16xf32>
    %cst_10 = arith.constant dense<0.000000e+00> : vector<8xf32>
    %18 = vector.multi_reduction <add>, %17, %cst_10 [1] : vector<8x16xf32> to vector<8xf32>
    %19 = vector.shape_cast %18 : vector<8xf32> to vector<8x1xf32>
    %20 = arith.subf %19, %15 : vector<8x1xf32>
    %21 = vector.broadcast %15 : vector<8x1xf32> to vector<8x16xf32>
    %22 = arith.subf %3, %21 : vector<8x16xf32>
    %23 = arith.select %9, %22, %3 : vector<8x16xi1>, vector<8x16xf32>
    %cst_11 = arith.constant dense<0xFF800000> : vector<8xf32>
    %24 = vector.multi_reduction <maximumf>, %23, %cst_11 [1] : vector<8x16xf32> to vector<8xf32>
    %25 = vector.shape_cast %24 : vector<8xf32> to vector<8x1xf32>
    %26 = vector.broadcast %25 : vector<8x1xf32> to vector<8x16xf32>
    %27 = arith.subf %23, %26 : vector<8x16xf32>
    %28 = math.exp %27 : vector<8x16xf32>
    %cst_12 = arith.constant dense<0.000000e+00> : vector<8xf32>
    %29 = vector.multi_reduction <add>, %28, %cst_12 [1] : vector<8x16xf32> to vector<8xf32>
    %30 = vector.shape_cast %29 : vector<8xf32> to vector<8x1xf32>
    %31 = math.log %30 : vector<8x1xf32>
    %32 = arith.addf %31, %25 : vector<8x1xf32>
    %33 = arith.subf %32, %20 : vector<8x1xf32>
    %c0_13 = arith.constant 0 : index
    %c0_14 = arith.constant 0 : index
    %34 = vector.load %arg6[%c0_13, %c0_14] : memref<1x1xf32, #tpu.memory_space<vmem>>, vector<1x1xf32>
    %35 = arith.mulf %33, %5 : vector<8x1xf32>
    %cst_15 = arith.constant dense<0.000000e+00> : vector<1xf32>
    %36 = vector.multi_reduction <add>, %35, %cst_15 [0] : vector<8x1xf32> to vector<1xf32>
    %37 = vector.shape_cast %36 : vector<1xf32> to vector<1x1xf32>
    %38 = arith.addf %34, %37 : vector<1x1xf32>
    %c0_16 = arith.constant 0 : index
    %c0_17 = arith.constant 0 : index
    %39 = vector.load %arg6[%c0_16, %c0_17] : memref<1x1xf32, #tpu.memory_space<vmem>>, vector<1x1xf32>
    tpu.vector_store %arg6[%c0_16, %c0_17], %38 {strides = array<i32>} : memref<1x1xf32, #tpu.memory_space<vmem>>, vector<1x1xf32>,
    %c0_18 = arith.constant 0 : index
    %c0_19 = arith.constant 0 : index
    %40 = vector.load %arg7[%c0_18, %c0_19] : memref<1x1xf32, #tpu.memory_space<vmem>>, vector<1x1xf32>
    %cst_20 = arith.constant dense<0.000000e+00> : vector<1xf32>
    %41 = vector.multi_reduction <add>, %5, %cst_20 [0] : vector<8x1xf32> to vector<1xf32>
    %42 = vector.shape_cast %41 : vector<1xf32> to vector<1x1xf32>
    %43 = arith.addf %40, %42 : vector<1x1xf32>
    %c0_21 = arith.constant 0 : index
    %c0_22 = arith.constant 0 : index
    %44 = vector.load %arg7[%c0_21, %c0_22] : memref<1x1xf32, #tpu.memory_space<vmem>>, vector<1x1xf32>
    tpu.vector_store %arg7[%c0_21, %c0_22], %43 {strides = array<i32>} : memref<1x1xf32, #tpu.memory_space<vmem>>, vector<1x1xf32>,
    %c1_i32 = arith.constant 1 : i32
    %45 = arith.cmpi eq, %arg0, %c1_i32 : i32
    %46 = arith.extui %45 : i1 to i32
    %c0_i32_23 = arith.constant 0 : i32
    %47 = arith.cmpi ne, %46, %c0_i32_23 : i32
    scf.if %47 {
      %c0_24 = arith.constant 0 : index
      %c0_25 = arith.constant 0 : index
      %48 = vector.load %arg6[%c0_24, %c0_25] : memref<1x1xf32, #tpu.memory_space<vmem>>, vector<1x1xf32>
      %c0_26 = arith.constant 0 : index
      %c0_27 = arith.constant 0 : index
      %49 = vector.load %arg7[%c0_26, %c0_27] : memref<1x1xf32, #tpu.memory_space<vmem>>, vector<1x1xf32>
      %50 = arith.divf %48, %49 : vector<1x1xf32>
      %c0_28 = arith.constant 0 : index
      %c0_29 = arith.constant 0 : index
      %51 = vector.load %arg5[%c0_28, %c0_29] : memref<1x1xf32, #tpu.memory_space<vmem>>, vector<1x1xf32>
      tpu.vector_store %arg5[%c0_28, %c0_29], %50 {strides = array<i32>} : memref<1x1xf32, #tpu.memory_space<vmem>>, vector<1x1xf32>,
    } else {
    }
    return
  }
  func.func @transform_0(%arg0: i32) -> (i32, i32) {
    %c0_i32 = arith.constant 0 : i32
    %c0_i32_0 = arith.constant 0 : i32
    return %arg0, %c0_i32 : i32, i32
  }
  func.func @transform_1(%arg0: i32) -> (i32, i32) {
    %c0_i32 = arith.constant 0 : i32
    %c0_i32_0 = arith.constant 0 : i32
    return %arg0, %c0_i32 : i32, i32
  }
  func.func @transform_2(%arg0: i32) -> (i32, i32) {
    %c0_i32 = arith.constant 0 : i32
    %c0_i32_0 = arith.constant 0 : i32
    return %arg0, %c0_i32 : i32, i32
  }
  func.func @transform_3(%arg0: i32) -> (i32, i32) {
    %c0_i32 = arith.constant 0 : i32
    %c0_i32_0 = arith.constant 0 : i32
    %c0_i32_1 = arith.constant 0 : i32
    return %c0_i32, %c0_i32_0 : i32, i32
  }
  func.func @transform_4(%arg0: i32) -> (i32, i32) {
    %c0_i32 = arith.constant 0 : i32
    %c0_i32_0 = arith.constant 0 : i32
    %c0_i32_1 = arith.constant 0 : i32
    return %c0_i32, %c0_i32_0 : i32, i32
  }
}

</mosaic_0001>

<bundles_post_ra>
// kernel: tpu_custom_call.1
= control target key start
LH: loop header
LB: loop body
LE: loop exit
PB: predicated region body
PF: predicated region fallthrough
CT: control target
= control target key end

     0   :  { %9 = vsyncpa [#allocation5], 0  ;;  %s467_s15 = smov 0   ;;  %s530_s0 = inlined_call_operand.vmem [shape: f32[16,16], index: 0, kind: input, shape index: {}]   ;;  %s531_s1 = inlined_call_operand.vmem [shape: s32[16,1], index: 1, kind: input, shape index: {}]   ;;  %s532_s2 = inlined_call_operand.vmem [shape: f32[16,1], index: 2, kind: input, shape index: {}]   ;;  %s533_s3 = inlined_call_operand.vmem [shape: f32[1,16], index: 3, kind: input, shape index: {}]   ;;  %s534_s4 = inlined_call_operand.hbm [shape: f32[1,1], index: 4, kind: output, shape index: {}]  }
   0x1 LB: > { %s473_s16 = sadd.s32 4294967295, %s437_s15   ;;  %p368_p0 = scmp.ge.s32.totalorder %s437_s15, 1  ;;  %s437_s15 = sphi %s467_s15, %s15_s15  }
   0x2   : > { %p175_p1 = scmp.lt.s32.totalorder %s437_s15, 3 }
   0x4   : > { %p176_p2 = pnand %p368_p0, %p175_p1 }
   0x5   : > { %p203_p3 = scmp.lt.s32.totalorder (!%p176_p2), %s473_s16, 1  ;;  %p372_p4 = scmp.ne.s32.totalorder (!%p176_p2), %s473_s16, 0 }
   0x6   : > { %179 = sbr.rel (%p176_p2) target bundleno = 656 (0x290), region = 36 }
   0xb   : > { %s204_s17 = scalar_select %p203_p3, %s473_s16, 1 }
   0xc   : > { %218 = sbr.rel (%p372_p4) target bundleno = 19 (0x13), region = 40 }
   0xd   : > { %s479_s18 = sshll.u32 %s204_s17, 3 }
   0xe   : > { %s206_s21 = scalar_lea.vmem %s530_s0, %s479_s18  ;;  %s210_s24 = scalar_lea.vmem %s531_s1, %s479_s18 }
   0xf   : > { %s214_s27 = scalar_lea.vmem %s532_s2, %s479_s18 }
  0x11   : > { %vm219_vm0 = vcmask 0   ;;  %v439_v0 = vmov 0.0  }
  0x12   : > { %220 = vst.msk [vmem:[#allocation2] sm:$0x1] %vm219_vm0, %v439_v0  ;;  %221 = vst.msk [vmem:[#allocation3] sm:$0x1] %vm219_vm0, %v439_v0 }
  0x13 PF: > { %v223_v1 = vld [vmem:[%s210_s24] sm:$0xff]  ;;  %v440_v2 = vmov 0   ;;  %v226_v3 = vlaneseq  ;;  %vm239_vm1 = vcmask 130048   ;;  %vm265_vm3 = vcmask 7168   ;;  %p374_p5 = scmp.ne.s32.totalorder %s473_s16, 1 }
  0x14   : > { %396 = vset.pattern.permute.xlu0 %v440_v2  ;;  %v373_v5 = vld [vmem:[%s533_s3] ss:$0 sm:$0xff]  ;;  %vm274_vm4 = vcmask 0  }
  0x15   : > { %229 = vperm.xlu0 %396, %v223_v1   ;;  %v227_v4 = vand.u32 127, %v226_v3  ;;  %v222_v10 = vld [vmem:[%s206_s21] sm:$0xff] }
  0x16   : > { %v224_v21 = vld [vmem:[%s214_s27] sm:$0xff] }
  0x17   : > { %v277_v22 = vsel %vm265_vm3, %v224_v21, 0.0 }
  0x18   : > { %v278_v23 = vrot.slane %v277_v22, 4 }
  0x19   : > { %v276_v28 = vld [vmem:[#allocation3] sm:$0x1]  ;;  %v263_v45 = vld [vmem:[#allocation2] sm:$0x1] }
  0x1a   : > { %v279_v24 = vadd.f32 %v278_v23, %v277_v22 }
  0x1c   : > { %v280_v25 = vrot.slane %v279_v24, 2 }
  0x1e   : > { %v281_v26 = vadd.f32 %v280_v25, %v279_v24 }
  0x20   : > { %v282_v27 = vrot.slane %v281_v26, 1 }
  0x22   : > { %v283_v29 = vadd.f32 %v282_v27, %v281_v26 }
  0x24   : > { %v284_v30 = vadd.f32 %v283_v29, %v276_v28 }
  0x26   : > { %285 = vst.msk [vmem:[#allocation3] sm:$0x1] %vm274_vm4, %v284_v30 }
  0x90   : > { %v230_v6 = vpop.permute.xlu0 %229 }
  0x91   : > { %vm231_vm2 = vcmp.eq.s32.totalorder %v227_v4, %v230_v6 }
  0x92   : > { %v238_v7 = vsel %vm231_vm2, %v373_v5, 0.0  ;;  %v243_v19 = vsel %vm231_vm2, %v222_v10, 0.0 }
  0x93   : > { %v240_v8 = vsel %vm239_vm1, %v238_v7, 0.0  ;;  %v244_v20 = vsel %vm239_vm1, %v243_v19, 0.0 }
  0x94   : > { %241 = vadd.xlane.f32.xlu0 %v240_v8 }
 0x11d   : > { %v242_v9 = vpop.xlane.xlu0 %241 }
 0x11e   : > { %v248_v11 = vsub.f32 %v222_v10, %v242_v9 }
 0x120   : > { %v249_v12 = vsel %vm231_vm2, %v248_v11, %v222_v10 }
 0x121   : > { %v250_v13 = vsel %vm239_vm1, %v249_v12, -inf }
 0x122   : > { %251 = vmax.xlane.f32.xlu1 %v250_v13 }
 0x1ab   : > { %v252_v14 = vpop.xlane.xlu1 %251 }
 0x1ac   : > { %v253_v15 = vsub.f32 %v249_v12, %v252_v14 }
 0x1ae   : > { %v254_v16 = vmul.f32 1.442695, %v253_v15 }
 0x1b0   : > { %397 = vpow2.f32 %v254_v16 }
 0x1bd   : > { %v398_v17 = vpop.eup %397 }
 0x1be   : > { %v256_v18 = vsel %vm239_vm1, %v398_v17, 0.0 }
 0x1bf   : > { %257 = vadd.xlane.f32.xlu1 %v256_v18 }
 0x1c3   : > { %245 = vadd.xlane.f32.xlu1 %v244_v20 }
 0x248   : > { %v258_v31 = vpop.xlane.xlu1 %257 }
 0x249   : > { %399 = vlog2.f32 %v258_v31 }
 0x24c   : > { %v246_v33 = vpop.xlane.xlu1 %245 }
 0x24d   : > { %v247_v36 = vsub.f32 %v246_v33, %v242_v9 }
 0x256   : > { %v400_v32 = vpop.eup %399 }
 0x257   : > { %v260_v34 = vmul.f32 0.6931472, %v400_v32 }
 0x259   : > { %v261_v35 = vadd.f32 %v260_v34, %v252_v14 }
 0x25b   : > { %v262_v37 = vsub.f32 %v261_v35, %v247_v36 }
 0x25d   : > { %v264_v38 = vmul.f32 %v262_v37, %v224_v21 }
 0x25f   : > { %v266_v39 = vsel %vm265_vm3, %v264_v38, 0.0 }
 0x260   : > { %v267_v40 = vrot.slane %v266_v39, 4 }
 0x262   : > { %v268_v41 = vadd.f32 %v267_v40, %v266_v39 }
 0x264   : > { %v269_v42 = vrot.slane %v268_v41, 2 }
 0x266   : > { %v270_v43 = vadd.f32 %v269_v42, %v268_v41 }
 0x268   : > { %v271_v44 = vrot.slane %v270_v43, 1 }
 0x26a   : > { %v272_v46 = vadd.f32 %v271_v44, %v270_v43  ;;  %289 = sbr.rel (%p374_p5) target bundleno = 641 (0x281), region = 44 }
 0x26c   : > { %v273_v47 = vadd.f32 %v272_v46, %v263_v45 }
 0x26e   : > { %275 = vst.msk [vmem:[#allocation2] sm:$0x1] %vm274_vm4, %v273_v47 }
 0x26f   : > { %v291_v48 = vld [vmem:[#allocation3] sm:$0x1] }
 0x270   : > { %401 = vrcp.f32 %v291_v48 }
 0x275   : > { %v290_v49 = vld [vmem:[#allocation2] sm:$0x1] }
 0x27d   : > { %v402_v50 = vpop.eup %401 }
 0x27e   : > { %v293_v51 = vmul.f32 %v402_v50, %v290_v49 }
 0x280   : > { %294 = vst.msk [vmem:[#allocation4] sm:$0x1] %vm274_vm4, %v293_v51 }
 0x281 PF: > { %p383_p6 = scmp.eq.s32.totalorder %s473_s16, 1  ;;  %s441_s6 = smov [#allocation4]  }
 0x282   : > { %s302_s7 = sshll.u32 %s441_s6, 4  ;;  %s303_s7 = int_to_ptr.vmem [resolvable:$true] %s302_s7 }
 0x283   : > { %s403_s8 = scalar_lea.vmem %s303_s7, 16  ;;  %s409_s9 = scalar_lea.vmem %s303_s7, 32 }
 0x284   : > { %p404_p7 = scmp.ne.s32.totalorder %s303_s7, %s403_s8  ;;  %p410_p10 = scmp.lt.s32.totalorder %s303_s7, %s303_s7 }
 0x285   : > { %p411_p11 = scmp.lt.s32.totalorder %s409_s9, %s403_s8 }
 0x286   : > { %p405_p8 = pnand %p404_p7, %p383_p6 }
 0x287   : > { %p412_p12 = por %p411_p11, %p410_p10 }
 0x288   : > { %p406_p9 = pneg %p405_p8 }
 0x28a   : > { %p413_p13 = pnand %p412_p12, %p406_p9 }
 0x28c   : > { %416 = shalt.err (!%p413_p13)
}
 0x28d   : > { %380 = dma.vmem_to_hbm [thread:$0]  (%p383_p6), %s303_s7, 16, %s534_s4, [#allocation5]  }
 0x28e   : > { %432 = dma.done.wait (%p383_p6), [#allocation5], 16  }
 0x28f   : > { %434 = vsyncadd (%p383_p6), [#allocation5], 4294967280 }
 0x290 PF: > { %s15_s15 = sadd.s32 1, %s437_s15  }
 0x291   : > { %p12_p0 = scmp.ge.s32.totalorder %s15_s15, 4  }
 0x293   :  { %14 = sbr.rel (!%p12_p0) target bundleno = 1 (0x1), region = 77 }
 0x298   :  { %315 = vsyncpa [#allocation5], 1 }
 0x299   :  { %317 = vsyncpa [#allocation5 + $0x1], 1 }

</bundles_post_ra>
